<compile_context>
chip_gen: v7x
topology: tpu7x:2x2x1
jax: 0.10.0
libtpu: 0.0.40
codegen_flags: <defaults>
</compile_context>

<pallas_src>
import functools

import jax
import jax.numpy as jnp
from jax.experimental import pallas as pl
from jax.experimental.pallas import tpu as pltpu


# Lane granularity of the batch tile; also the largest per-inner-step chunk.
_LANE_CHUNK = 512


def _round_up(n: int, m: int) -> int:
    return ((n + m - 1) // m) * m


def _default_compute_dtype():
    """bf16 on v6e/v7x (native bf16 VALU -> ~2x VPU throughput, half the x DMA);
    f32 on v5e and older (no bf16 VPU) and on non-TPU backends."""
    try:
        kind = jax.devices()[0].device_kind.lower()
    except Exception:
        return jnp.float32
    if "tpu" not in kind:
        return jnp.float32
    for old in ("v2", "v3", "v4", "v5"):
        if old in kind:
            return jnp.float32
    return jnp.bfloat16


def cem_forward_kernel(x_ref, w1_ref, b1_ref, w2_ref, b2_ref, o_ref):
    """One batch tile.

    x_ref : (state_dim, TB)  transposed input tile (batch on lanes), compute dtype
    w1_ref: (hidden, state_dim)  layer-1 weight (resident), compute dtype
    b1_ref: (hidden, 1)          layer-1 bias   (resident), compute dtype
    w2_ref: (hidden, 1)          layer-2 weight (resident), compute dtype
    b2_ref: (1,) f32             layer-2 bias scalar, SMEM
    o_ref : (1, TB) f32          lane-dense output tile
    """
    state_dim, tb = x_ref.shape

    # Lane-chunk size: keeps the (hidden, chunk) intermediates vreg-resident
    # (bf16: ~16 vregs per temp, f32: ~16 at chunk=256) instead of materializing
    # a (hidden, TB) temporary in VMEM and eating vld/vst slots.
    chunk = min(tb, 512 if x_ref.dtype == jnp.bfloat16 else 256)
    n_chunks = tb // chunk

    # Resident parameters: read once per grid step (tiny).
    w1_cols = [w1_ref[:, s:s + 1] for s in range(state_dim)]   # (hidden, 1) each
    b1v = b1_ref[...]                                          # (hidden, 1)
    w2v = w2_ref[...]                                          # (hidden, 1)
    b2v = b2_ref[0]                                            # f32 scalar (SMEM)

    @pl.loop(0, n_chunks)
    def _(c):
        j = pl.multiple_of(c * chunk, chunk)
        x_c = x_ref[:, pl.ds(j, chunk)]                        # (state_dim, chunk)

        # Layer 1 (K = 2 contraction) as broadcast FMAs on the VPU.
        # NOTE: deliberately NOT jnp.dot / MXU -- K=2, N=1 shapes would run the
        # systolic array at <2% utilization and require extra transposes.
        h = b1v + w1_cols[0] * x_c[0:1, :]                     # (hidden, chunk)
        for s in range(1, state_dim):                          # static unroll
            h = h + w1_cols[s] * x_c[s:s + 1, :]

        h = jnp.maximum(h, 0.0)                                # ReLU (VPU)

        # Layer 2 (N = 1) as elementwise multiply + sublane (axis-0) reduction
        # (XLU path); accumulate in f32 regardless of compute dtype.
        acc = jnp.sum(h * w2v, axis=0, keepdims=True, dtype=jnp.float32)
        o_ref[:, pl.ds(j, chunk)] = (acc + b2v).astype(o_ref.dtype)


@functools.partial(jax.jit, static_argnames=("block_b", "compute_dtype"))
def cem_forward_t(x_t, w1, b1, w2, b2, *, block_b: int = 16384, compute_dtype=None):
    """Forward pass with states already in (state_dim, B) layout (batch on lanes).

    x_t: (state_dim, B); w1: (state_dim, hidden); b1: (1, hidden);
    w2: (hidden, 1); b2: (1, 1).  Returns (B, 1) f32.
    """
    if compute_dtype is None:
        compute_dtype = _default_compute_dtype()

    state_dim, B = x_t.shape
    hidden = w1.shape[1]

    # Lane-dense batch tile: multiple of _LANE_CHUNK, large enough to amortize the
    # ~600-cycle per-grid-step overhead.  When B is large, cap at ceil(B/2) so the
    # "parallel" batch axis has >= 2 grid steps (both v7x TensorCores get work).
    tb = _round_up(min(block_b, max(B, 1)), _LANE_CHUNK)
    if B > 2 * _LANE_CHUNK:
        tb = min(tb, _round_up(pl.cdiv(B, 2), _LANE_CHUNK))
    b_pad = _round_up(max(B, 1), tb)
    num_tiles = b_pad // tb

    # Param / input plumbing (casts + pad only).
    x_c = x_t.astype(compute_dtype)
    if b_pad != B:
        x_c = jnp.pad(x_c, ((0, 0), (0, b_pad - B)))           # (state_dim, B_pad)
    w1_t = w1.astype(compute_dtype).T                           # (hidden, state_dim)
    b1_t = b1.astype(compute_dtype).reshape(hidden, 1)          # (hidden, 1)
    w2_c = w2.astype(compute_dtype).reshape(hidden, 1)          # (hidden, 1)
    b2_s = jnp.asarray(b2, jnp.float32).reshape(1)              # (1,) scalar -> SMEM

    grid_spec = pltpu.PrefetchScalarGridSpec(
        num_scalar_prefetch=0,
        grid=(num_tiles,),
        in_specs=[
            pl.BlockSpec((state_dim, tb), lambda i: (0, i)),        # x tile, pipelined
            pl.BlockSpec((hidden, state_dim), lambda i: (0, 0)),    # w1 resident
            pl.BlockSpec((hidden, 1), lambda i: (0, 0)),            # b1 resident
            pl.BlockSpec((hidden, 1), lambda i: (0, 0)),            # w2 resident
            pl.BlockSpec(memory_space=pltpu.MemorySpace.SMEM),      # b2 scalar in SMEM
        ],
        out_specs=pl.BlockSpec((1, tb), lambda i: (0, i)),          # lane-dense output
    )

    out = pl.pallas_call(
        cem_forward_kernel,
        out_shape=jax.ShapeDtypeStruct((1, b_pad), jnp.float32),
        grid_spec=grid_spec,
        compiler_params=pltpu.CompilerParams(
            dimension_semantics=("parallel",),  # batch tiles independent; megacore on v7x
        ),
    )(x_c, w1_t, b1_t, w2_c, b2_s)

    return out[0, :B].reshape(B, 1)


def cem_forward(x, w1, b1, w2, b2, **kwargs):
    """x: (B, state_dim) f32 -> (B, 1) f32, matching the PyTorch module's forward.

    NOTE: the transpose below is pure layout plumbing (one extra HBM read/write
    and a dispatch before the kernel).  Callers that can produce states in
    (state_dim, B) layout should call cem_forward_t directly.
    """
    # TODO(synk): fuse this transpose/cast into x's upstream producer.
    return cem_forward_t(jnp.asarray(x, jnp.float32).T, w1, b1, w2, b2, **kwargs)


def init_cem_params(key, state_dim=2, hidden=64):
    """Deterministic init mimicking PyTorch nn.Linear default U[-1/sqrt(fan_in), 1/sqrt(fan_in)]."""
    k1, k2, k3, k4 = jax.random.split(key, 4)
    bound1 = 1.0 / jnp.sqrt(jnp.float32(state_dim))
    bound2 = 1.0 / jnp.sqrt(jnp.float32(hidden))
    # Stored as (in, out): x @ W is equivalent to PyTorch x @ W.T.
    w1 = jax.random.uniform(k1, (state_dim, hidden), jnp.float32, -bound1, bound1)
    b1 = jax.random.uniform(k2, (1, hidden), jnp.float32, -bound1, bound1)
    w2 = jax.random.uniform(k3, (hidden, 1), jnp.float32, -bound2, bound2)
    b2 = jax.random.uniform(k4, (1, 1), jnp.float32, -bound2, bound2)
    return w1, b1, w2, b2


def _reference(x, w1, b1, w2, b2):
    return jnp.maximum(x @ w1 + b1, 0.0) @ w2 + b2


if __name__ == "__main__":
    key = jax.random.PRNGKey(0)
    k_param, k_x1, k_x2 = jax.random.split(key, 3)

    state_dim = 2
    hidden = 64
    w1, b1, w2, b2 = init_cem_params(k_param, state_dim=state_dim, hidden=hidden)

    # Small batch, forced f32 compute path -> tight tolerance (numerics check).
    batch = 8
    x_small = jax.random.normal(k_x1, (batch, state_dim), jnp.float32)
    out_small = jax.block_until_ready(
        cem_forward(x_small, w1, b1, w2, b2, compute_dtype=jnp.float32))
    ref_small = _reference(x_small, w1, b1, w2, b2)
    assert out_small.shape == (batch, 1)
    assert jnp.allclose(out_small, ref_small, atol=1e-4, rtol=1e-4)

    # Larger batch with a small tile: exercises the grid + padding path and the
    # default (generation-dependent, possibly bf16) compute path.
    batch_big = 1400
    x_big = jax.random.normal(k_x2, (batch_big, state_dim), jnp.float32)
    out_big = jax.block_until_ready(cem_forward(x_big, w1, b1, w2, b2, block_b=512))
    ref_big = _reference(x_big, w1, b1, w2, b2)
    tol = 5e-2 if _default_compute_dtype() == jnp.bfloat16 else 1e-4
    assert out_big.shape == (batch_big, 1)
    assert jnp.allclose(out_big, ref_big, atol=tol, rtol=tol)

    print("KERNEL_OK")
</pallas_src>

<mosaic_0001>
module attributes {stable_mosaic.version = 11 : i64} {
  func.func @cem_forward_kernel(%arg0: i32, %arg1: memref<2x512xf32, #tpu.memory_space<vmem>>, %arg2: memref<64x2xf32, #tpu.memory_space<vmem>>, %arg3: memref<64x1xf32, #tpu.memory_space<vmem>>, %arg4: memref<64x1xf32, #tpu.memory_space<vmem>>, %arg5: memref<1xf32, #tpu.memory_space<smem>>, %arg6: memref<1x512xf32, #tpu.memory_space<vmem>>) attributes {dimension_semantics = [#tpu.dimension_semantics<parallel>], iteration_bounds = array<i64: 1>, scalar_prefetch = 0 : i64, scratch_operands = 0 : i64, tpu.core_type = #tpu.core_type<tc>, window_params = [{transform_indices = @transform_0, window_bounds = array<i64: 2, 512>}, {pipeline_mode = #tpu.pipeline_mode<synchronous>, transform_indices = @transform_1, window_bounds = array<i64: 64, 2>}, {pipeline_mode = #tpu.pipeline_mode<synchronous>, transform_indices = @transform_2, window_bounds = array<i64: 64, 1>}, {pipeline_mode = #tpu.pipeline_mode<synchronous>, transform_indices = @transform_3, window_bounds = array<i64: 64, 1>}, {transform_indices = @transform_4, window_bounds = array<i64: 1>}, {transform_indices = @transform_5, window_bounds = array<i64: 1, 512>}]} {
    %c0 = arith.constant 0 : index
    %c0_0 = arith.constant 0 : index
    %0 = vector.load %arg2[%c0, %c0_0] : memref<64x2xf32, #tpu.memory_space<vmem>>, vector<64x1xf32>
    %c0_1 = arith.constant 0 : index
    %c1 = arith.constant 1 : index
    %1 = vector.load %arg2[%c0_1, %c1] : memref<64x2xf32, #tpu.memory_space<vmem>>, vector<64x1xf32>
    %c0_2 = arith.constant 0 : index
    %c0_3 = arith.constant 0 : index
    %2 = vector.load %arg3[%c0_2, %c0_3] : memref<64x1xf32, #tpu.memory_space<vmem>>, vector<64x1xf32>
    %c0_4 = arith.constant 0 : index
    %c0_5 = arith.constant 0 : index
    %3 = vector.load %arg4[%c0_4, %c0_5] : memref<64x1xf32, #tpu.memory_space<vmem>>, vector<64x1xf32>
    %c0_6 = arith.constant 0 : index
    %4 = memref.load %arg5[%c0_6] : memref<1xf32, #tpu.memory_space<smem>>
    %c0_i32 = arith.constant 0 : i32
    %c2_i32 = arith.constant 2 : i32
    %5 = arith.addi %c0_i32, %c2_i32 : i32
    %c1_i32 = arith.constant 1 : i32
    scf.for %arg7 = %c0_i32 to %5 step %c1_i32  : i32 {
      %c1_i32_8 = arith.constant 1 : i32
      %6 = arith.muli %arg7, %c1_i32_8 : i32
      %c0_i32_9 = arith.constant 0 : i32
      %7 = arith.addi %c0_i32_9, %6 : i32
      %c256_i32 = arith.constant 256 : i32
      %8 = arith.muli %7, %c256_i32 : i32
      %9 = tpu.assume_multiple %8, 256 : i32
      %c0_10 = arith.constant 0 : index
      %10 = arith.index_cast %9 : i32 to index
      %11 = vector.load %arg1[%c0_10, %10] : memref<2x512xf32, #tpu.memory_space<vmem>>, vector<2x256xf32>
      %12 = vector.extract_strided_slice %11 {offsets = [0, 0], sizes = [1, 256], strides = [1, 1]} : vector<2x256xf32> to vector<1x256xf32>
      %13 = vector.broadcast %0 : vector<64x1xf32> to vector<64x256xf32>
      %14 = vector.broadcast %12 : vector<1x256xf32> to vector<64x256xf32>
      %15 = arith.mulf %13, %14 : vector<64x256xf32>
      %16 = vector.broadcast %2 : vector<64x1xf32> to vector<64x256xf32>
      %17 = arith.addf %16, %15 : vector<64x256xf32>
      %18 = vector.extract_strided_slice %11 {offsets = [1, 0], sizes = [1, 256], strides = [1, 1]} : vector<2x256xf32> to vector<1x256xf32>
      %19 = vector.broadcast %1 : vector<64x1xf32> to vector<64x256xf32>
      %20 = vector.broadcast %18 : vector<1x256xf32> to vector<64x256xf32>
      %21 = arith.mulf %19, %20 : vector<64x256xf32>
      %22 = arith.addf %17, %21 : vector<64x256xf32>
      %cst = arith.constant 0.000000e+00 : f32
      %23 = vector.broadcast %cst : f32 to vector<64x256xf32>
      %24 = arith.maximumf %22, %23 : vector<64x256xf32>
      %25 = vector.broadcast %3 : vector<64x1xf32> to vector<64x256xf32>
      %26 = arith.mulf %24, %25 : vector<64x256xf32>
      %cst_11 = arith.constant dense<0.000000e+00> : vector<256xf32>
      %27 = vector.multi_reduction <add>, %26, %cst_11 [0] : vector<64x256xf32> to vector<256xf32>
      %28 = vector.shape_cast %27 : vector<256xf32> to vector<1x256xf32>
      %29 = vector.broadcast %4 : f32 to vector<1x256xf32>
      %30 = arith.addf %28, %29 : vector<1x256xf32>
      %c0_12 = arith.constant 0 : index
      %31 = arith.index_cast %9 : i32 to index
      %32 = vector.load %arg6[%c0_12, %31] : memref<1x512xf32, #tpu.memory_space<vmem>>, vector<1x256xf32>
      tpu.vector_store %arg6[%c0_12, %31], %30 {strides = array<i32>} : memref<1x512xf32, #tpu.memory_space<vmem>>, vector<1x256xf32>,
    }
    %c2_i32_7 = arith.constant 2 : i32
    return
  }
  func.func @transform_0(%arg0: i32) -> (i32, i32) {
    %c0_i32 = arith.constant 0 : i32
    %c0_i32_0 = arith.constant 0 : i32
    return %c0_i32, %arg0 : i32, i32
  }
  func.func @transform_1(%arg0: i32) -> (i32, i32) {
    %c0_i32 = arith.constant 0 : i32
    %c0_i32_0 = arith.constant 0 : i32
    %c0_i32_1 = arith.constant 0 : i32
    return %c0_i32, %c0_i32_0 : i32, i32
  }
  func.func @transform_2(%arg0: i32) -> (i32, i32) {
    %c0_i32 = arith.constant 0 : i32
    %c0_i32_0 = arith.constant 0 : i32
    %c0_i32_1 = arith.constant 0 : i32
    return %c0_i32, %c0_i32_0 : i32, i32
  }
  func.func @transform_3(%arg0: i32) -> (i32, i32) {
    %c0_i32 = arith.constant 0 : i32
    %c0_i32_0 = arith.constant 0 : i32
    %c0_i32_1 = arith.constant 0 : i32
    return %c0_i32, %c0_i32_0 : i32, i32
  }
  func.func @transform_4(%arg0: i32) -> i32 {
    %c0_i32 = arith.constant 0 : i32
    %c0_i32_0 = arith.constant 0 : i32
    return %c0_i32 : i32
  }
  func.func @transform_5(%arg0: i32) -> (i32, i32) {
    %c0_i32 = arith.constant 0 : i32
    %c0_i32_0 = arith.constant 0 : i32
    return %c0_i32, %arg0 : i32, i32
  }
}

</mosaic_0001>

<bundles_post_ra>
// kernel: cem_forward_t.1
= control target key start
LH: loop header
LB: loop body
LE: loop exit
PB: predicated region body
PF: predicated region fallthrough
CT: control target
= control target key end

     0   :  { %s591_s14 = smov 0   ;;  %s722_s0 = inlined_call_operand.vmem [shape: f32[2,512], index: 0, kind: input, shape index: {}]   ;;  %s723_s1 = inlined_call_operand.vmem [shape: f32[64,2], index: 1, kind: input, shape index: {}]   ;;  %s724_s2 = inlined_call_operand.vmem [shape: f32[64,1], index: 2, kind: input, shape index: {}]   ;;  %s725_s4 = inlined_call_operand.<no memory space> [shape: f32[1], index: 4, kind: input, shape index: {}]   ;;  %s726_s5 = inlined_call_operand.vmem [shape: f32[1,512], index: 5, kind: output, shape index: {}]   ;;  %s727_s3 = inlined_call_operand.vmem [shape: f32[64,1], index: 3, kind: input, shape index: {}]  }
   0x1   :  { %v474_v0 = vld [vmem:[%s723_s1] sm:$0xff]  ;;  %v479_v1 = vld [vmem:[%s723_s1 + $0x8] sm:$0xff]  ;;  %v484_v2 = vld [vmem:[%s723_s1 + $0x10] sm:$0xff] }
   0x2   :  { %737 = vst [vmem:[#allocation3_spill] sm:$0xff] %v474_v0  ;;  %738 = vst [vmem:[#allocation4_spill] sm:$0xff] %v479_v1  ;;  %v489_v3 = vld [vmem:[%s723_s1 + $0x18] sm:$0xff]  ;;  %v494_v4 = vld [vmem:[%s723_s1 + $0x20] sm:$0xff] }
   0x3   :  { %739 = vst [vmem:[#allocation5_spill] sm:$0xff] %v484_v2  ;;  %740 = vst [vmem:[#allocation6_spill] sm:$0xff] %v489_v3  ;;  %v499_v5 = vld [vmem:[%s723_s1 + $0x28] sm:$0xff]  ;;  %v504_v6 = vld [vmem:[%s723_s1 + $0x30] sm:$0xff] }
   0x4   :  { %741 = vst [vmem:[#allocation7_spill] sm:$0xff] %v494_v4  ;;  %742 = vst [vmem:[#allocation8_spill] sm:$0xff] %v499_v5  ;;  %v509_v7 = vld [vmem:[%s723_s1 + $0x38] sm:$0xff]  ;;  %v514_v8 = vld [vmem:[%s724_s2] sm:$0xff] }
   0x5   :  { %743 = vst [vmem:[#allocation9_spill] sm:$0xff] %v504_v6  ;;  %744 = vst [vmem:[#allocation10_spill] sm:$0xff] %v509_v7  ;;  %v519_v9 = vld [vmem:[%s724_s2 + $0x8] sm:$0xff]  ;;  %v524_v10 = vld [vmem:[%s724_s2 + $0x10] sm:$0xff] }
   0x6   :  { %v529_v11 = vld [vmem:[%s724_s2 + $0x18] sm:$0xff]  ;;  %v534_v12 = vld [vmem:[%s724_s2 + $0x20] sm:$0xff]  ;;  %v539_v13 = vld [vmem:[%s724_s2 + $0x28] sm:$0xff] }
   0x7   :  { %v544_v14 = vld [vmem:[%s724_s2 + $0x30] sm:$0xff]  ;;  %v549_v15 = vld [vmem:[%s724_s2 + $0x38] sm:$0xff]  ;;  %v554_v16 = vld [vmem:[%s727_s3] sm:$0xff] }
   0x8   :  { %v559_v17 = vld [vmem:[%s727_s3 + $0x8] sm:$0xff]  ;;  %v564_v18 = vld [vmem:[%s727_s3 + $0x10] sm:$0xff]  ;;  %v569_v19 = vld [vmem:[%s727_s3 + $0x18] sm:$0xff] }
   0x9   :  { %v574_v20 = vld [vmem:[%s727_s3 + $0x20] sm:$0xff]  ;;  %v579_v21 = vld [vmem:[%s727_s3 + $0x28] sm:$0xff]  ;;  %v584_v22 = vld [vmem:[%s727_s3 + $0x30] sm:$0xff] }
   0xa   :  { %v589_v23 = vld [vmem:[%s727_s3 + $0x38] sm:$0xff] }
   0xb LB: > { %v747_v5 = vld [vmem:[#allocation8_spill] sm:$0xff]  ;;  %v748_v4 = vld [vmem:[#allocation7_spill] sm:$0xff]  ;;  %v749_v3 = vld [vmem:[#allocation6_spill] sm:$0xff]  ;;  %v438_v24 = vmov 1   ;;  %v439_v25 = vmov 0   ;;  %s408_s3 = sshll.u32 %s436_s14, 8  ;;  %v728_v38 = vlaneseq  ;;  %s436_s14 = sphi %s591_s14, %s51_s14  }
   0xc   : > { %v745_v7 = vld [vmem:[#allocation10_spill] sm:$0xff]  ;;  %v746_v6 = vld [vmem:[#allocation9_spill] sm:$0xff]  ;;  %v751_v1 = vld [vmem:[#allocation4_spill] sm:$0xff]  ;;  %422 = vset.pattern.permute.xlu0 %v438_v24  ;;  %421 = vset.pattern.permute.xlu1 %v439_v25  ;;  %s635_s15 = sshra.s32 %s408_s3, 7  ;;  %s51_s14 = sadd.s32 1, %s436_s14  }
   0xd   : > { %v750_v2 = vld [vmem:[#allocation5_spill] sm:$0xff]  ;;  %v752_v0 = vld [vmem:[#allocation3_spill] sm:$0xff]  ;;  %s409_s16 = sshll.u32 %s635_s15, 1  ;;  %v639_v40 = vshrl.u32 %v728_v38, 7  ;;  %s390_s23 = scalar_lea.vmem %s726_s5, %s635_s15 }
   0xe   : > { %190 = vperm.xlu0 %422, %v752_v0   ;;  %70 = vperm.xlu1 %421, %v750_v2   ;;  %s56_s18 = scalar_lea.vmem %s722_s0, %s409_s16  ;;  %p48_p0 = scmp.ge.s32.totalorder %s51_s14, 2  }
   0xf   : > { %v101_v43 = vsub.s32 0, %v639_v40  ;;  %v105_v44 = vsub.s32 2, %v639_v40  ;;  %v57_v45 = vld [vmem:[%s56_s18] sm:$0xf]  ;;  %v223_v50 = vsub.s32 1, %v639_v40  ;;  %v227_v51 = vsub.s32 3, %v639_v40 }
  0x11   : > { %v102_v48 = vrot.slane %v57_v45, %v101_v43  ;;  %v106_v49 = vrot.slane %v57_v45, %v105_v44  ;;  %v224_v55 = vrot.slane %v57_v45, %v223_v50  ;;  %v228_v56 = vrot.slane %v57_v45, %v227_v51 }
  0x12   : > { %198 = vperm.xlu0 %422, %v750_v2   ;;  %75 = vperm.xlu1 %421, %v749_v3  }
  0x13   : > { %v654_v53 = vrot.slane %v102_v48, %v101_v43  ;;  %v656_v54 = vrot.slane %v106_v49, %v101_v43  ;;  %v662_v61 = vrot.slane %v224_v55, %v223_v50  ;;  %v664_v62 = vrot.slane %v228_v56, %v223_v50 }
  0x16   : > { %202 = vperm.xlu0 %422, %v749_v3   ;;  %85 = vperm.xlu1 %421, %v747_v5  }
  0x1a   : > { %206 = vperm.xlu0 %422, %v748_v4   ;;  %140 = vperm.xlu1 %421, %v519_v9  }
  0x1e   : > { %210 = vperm.xlu0 %422, %v747_v5   ;;  %423 = vset.pattern.permute.xlu1 %v438_v24 }
  0x1f   : > { %194 = vperm.xlu1 %423, %v751_v1  }
  0x22   : > { %425 = vset.pattern.permute.xlu0 %v439_v25 }
  0x23   : > { %60 = vperm.xlu0 %425, %v752_v0   ;;  %424 = vset.pattern.permute.xlu1 %v439_v25 }
  0x24   : > { %145 = vperm.xlu1 %424, %v524_v10  }
  0x27   : > { %65 = vperm.xlu0 %425, %v751_v1  }
  0x28   : > { %150 = vperm.xlu1 %424, %v529_v11  }
  0x2b   : > { %80 = vperm.xlu0 %425, %v748_v4  }
  0x2c   : > { %155 = vperm.xlu1 %424, %v534_v12  }
  0x2f   : > { %135 = vperm.xlu0 %425, %v514_v8  }
  0x30   : > { %289 = vperm.xlu1 %424, %v554_v16  }
  0x33   : > { %294 = vperm.xlu0 %425, %v559_v17  }
  0x34   : > { %90 = vperm.xlu1 %424, %v746_v6  }
  0x37   : > { %165 = vperm.xlu0 %425, %v544_v14  }
  0x38   : > { %160 = vperm.xlu1 %424, %v539_v13  }
  0x3b   : > { %170 = vperm.xlu0 %425, %v549_v15  }
  0x3c   : > { %299 = vperm.xlu1 %424, %v564_v18  }
  0x3f   : > { %309 = vperm.xlu0 %425, %v574_v20  }
  0x40   : > { %95 = vperm.xlu1 %424, %v745_v7  }
  0x43   : > { %319 = vperm.xlu0 %425, %v584_v22  }
  0x44   : > { %426 = vset.pattern.permute.xlu1 %v438_v24 }
  0x45   : > { %214 = vperm.xlu1 %426, %v746_v6  }
  0x49   : > { %427 = vset.pattern.permute.xlu1 %v439_v25 }
  0x4a   : > { %304 = vperm.xlu1 %427, %v569_v19  }
  0x4e   : > { %428 = vset.pattern.permute.xlu1 %v438_v24 }
  0x4f   : > { %218 = vperm.xlu1 %428, %v745_v7  }
  0x53   : > { %429 = vset.pattern.permute.xlu1 %v439_v25 }
  0x54   : > { %314 = vperm.xlu1 %429, %v579_v21  }
  0x58   : > { %324 = vperm.xlu1 %429, %v589_v23  }
  0x8d   : > { %v71_v26 = vpop.permute.xlu1 %70  ;;  %v191_v27 = vpop.permute.xlu0 %190 }
  0x8e   : > { %v121_v25 = vmul.f32 %v654_v53, %v71_v26  ;;  %v122_v43 = vmul.f32 %v656_v54, %v71_v26  ;;  %v240_v51 = vmul.f32 %v664_v62, %v191_v27 }
  0x91   : > { %v76_v28 = vpop.permute.xlu1 %75  ;;  %v199_v29 = vpop.permute.xlu0 %198 }
  0x92   : > { %v123_v50 = vmul.f32 %v654_v53, %v76_v28  ;;  %v124_v56 = vmul.f32 %v656_v54, %v76_v28  ;;  %v243_v1 = vmul.f32 %v662_v61, %v199_v29  ;;  %v244_v26 = vmul.f32 %v664_v62, %v199_v29 }
  0x95   : > { %v628_v30 = vpop.permute.xlu1 %85  ;;  %v203_v31 = vpop.permute.xlu0 %202 }
  0x99   : > { %v141_v32 = vpop.permute.xlu1 %140  ;;  %v630_v33 = vpop.permute.xlu0 %206 }
  0x9d   : > { %v632_v34 = vpop.permute.xlu0 %210 }
  0x9e   : > { %v195_v35 = vpop.permute.xlu1 %194 }
  0x9f   : > { %v241_v2 = vmul.f32 %v662_v61, %v195_v35  ;;  %v242_v3 = vmul.f32 %v664_v62, %v195_v35  ;;  %v128_v35 = vmul.f32 %v656_v54, %v628_v30 }
  0xa2   : > { %v61_v37 = vpop.permute.xlu0 %60 }
  0xa3   : > { %v146_v36 = vpop.permute.xlu1 %145  ;;  %v117_v58 = vmul.f32 %v654_v53, %v61_v37  ;;  %v118_v59 = vmul.f32 %v656_v54, %v61_v37  ;;  %v239_v37 = vmul.f32 %v662_v61, %v191_v27 }
  0xa4   : > { %v177_v55 = vadd.f32 %v146_v36, %v121_v25  ;;  %v178_v38 = vadd.f32 %v146_v36, %v122_v43  ;;  %v245_v36 = vmul.f32 %v662_v61, %v203_v31  ;;  %v246_v43 = vmul.f32 %v664_v62, %v203_v31 }
  0xa5   : > { %v247_v31 = vmul.f32 %v662_v61, %v630_v33 }
  0xa6   : > { %v66_v41 = vpop.permute.xlu0 %65  ;;  %v259_v28 = vadd.f32 %v243_v1, %v177_v55  ;;  %v248_v1 = vmul.f32 %v664_v62, %v630_v33 }
  0xa7   : > { %v151_v39 = vpop.permute.xlu1 %150  ;;  %v119_v63 = vmul.f32 %v654_v53, %v66_v41  ;;  %v120_v24 = vmul.f32 %v656_v54, %v66_v41 }
  0xa8   : > { %v179_v27 = vadd.f32 %v151_v39, %v123_v50  ;;  %v180_v25 = vadd.f32 %v151_v39, %v124_v56 }
  0xa9   : > { %v175_v0 = vadd.f32 %v141_v32, %v119_v63  ;;  %v176_v41 = vadd.f32 %v141_v32, %v120_v24  ;;  %v260_v63 = vadd.f32 %v244_v26, %v178_v38 }
  0xaa   : > { %v81_v47 = vpop.permute.xlu0 %80  ;;  %v261_v38 = vadd.f32 %v245_v36, %v179_v27  ;;  %v262_v55 = vadd.f32 %v246_v43, %v180_v25 }
  0xab   : > { %v644_v42 = vpop.permute.xlu1 %155  ;;  %v125_v32 = vmul.f32 %v654_v53, %v81_v47  ;;  %v126_v24 = vmul.f32 %v656_v54, %v81_v47  ;;  %v257_v29 = vadd.f32 %v241_v2, %v175_v0  ;;  %v249_v0 = vmul.f32 %v662_v61, %v632_v34 }
  0xac   : > { %v250_v2 = vmul.f32 %v664_v62, %v632_v34  ;;  %v276_v50 = vmax.f32 %v260_v63, 0.0  ;;  %v277_v43 = vmax.f32 %v261_v38, 0.0 }
  0xad   : > { %v182_v56 = vadd.f32 %v644_v42, %v126_v24 }
  0xae   : > { %v136_v57 = vpop.permute.xlu0 %135 }
  0xaf   : > { %v648_v46 = vpop.permute.xlu1 %289  ;;  %v173_v44 = vadd.f32 %v136_v57, %v117_v58  ;;  %v174_v45 = vadd.f32 %v136_v57, %v118_v59 }
  0xb1   : > { %v255_v58 = vadd.f32 %v239_v37, %v173_v44  ;;  %v256_v57 = vadd.f32 %v240_v51, %v174_v45  ;;  %v258_v44 = vadd.f32 %v242_v3, %v176_v41  ;;  %v127_v37 = vmul.f32 %v654_v53, %v628_v30 }
  0xb2   : > { %v295_v49 = vpop.permute.xlu0 %294  ;;  %v275_v3 = vmax.f32 %v259_v28, 0.0  ;;  %v181_v30 = vadd.f32 %v644_v42, %v125_v32  ;;  %v273_v41 = vmax.f32 %v257_v29, 0.0  ;;  %v278_v28 = vmax.f32 %v262_v55, 0.0 }
  0xb3   : > { %v652_v52 = vpop.permute.xlu1 %90  ;;  %v271_v39 = vmax.f32 %v255_v58, 0.0  ;;  %v272_v51 = vmax.f32 %v256_v57, 0.0  ;;  %v274_v26 = vmax.f32 %v258_v44, 0.0  ;;  %v264_v44 = vadd.f32 %v248_v1, %v182_v56 }
  0xb4   : > { %v129_v57 = vmul.f32 %v654_v53, %v652_v52  ;;  %v130_v27 = vmul.f32 %v656_v54, %v652_v52  ;;  %v329_v25 = vmul.f32 %v295_v49, %v273_v41  ;;  %v263_v29 = vadd.f32 %v247_v31, %v181_v30 }
  0xb5   : > { %v327_v58 = vmul.f32 %v648_v46, %v271_v39  ;;  %v328_v33 = vmul.f32 %v648_v46, %v272_v51  ;;  %v330_v34 = vmul.f32 %v295_v49, %v274_v26 }
  0xb6   : > { %v166_v45 = vpop.permute.xlu0 %165 }
  0xb7   : > { %v660_v60 = vpop.permute.xlu1 %160  ;;  %v343_v4 = vadd.f32 %v329_v25, %v327_v58  ;;  %v356_v52 = vadd.f32 %v330_v34, %v328_v33  ;;  %v185_v41 = vadd.f32 %v166_v45, %v129_v57  ;;  %v186_v49 = vadd.f32 %v166_v45, %v130_v27 }
  0xb8   : > { %v183_v63 = vadd.f32 %v660_v60, %v127_v37  ;;  %v184_v42 = vadd.f32 %v660_v60, %v128_v35 }
  0xba   : > { %v171_v36 = vpop.permute.xlu0 %170  ;;  %v265_v60 = vadd.f32 %v249_v0, %v183_v63  ;;  %v266_v35 = vadd.f32 %v250_v2, %v184_v42 }
  0xbb   : > { %v300_v48 = vpop.permute.xlu1 %299 }
  0xbc   : > { %v331_v39 = vmul.f32 %v300_v48, %v275_v3  ;;  %v332_v51 = vmul.f32 %v300_v48, %v276_v50  ;;  %v279_v3 = vmax.f32 %v263_v29, 0.0  ;;  %v280_v48 = vmax.f32 %v264_v44, 0.0 }
  0xbd   : > { %v281_v0 = vmax.f32 %v265_v60, 0.0  ;;  %v282_v2 = vmax.f32 %v266_v35, 0.0 }
  0xbe   : > { %v357_v7 = vadd.f32 %v356_v52, %v332_v51  ;;  %v310_v31 = vpop.permute.xlu0 %309 }
  0xbf   : > { %v96_v59 = vpop.permute.xlu1 %95  ;;  %v335_v33 = vmul.f32 %v310_v31, %v279_v3  ;;  %v336_v57 = vmul.f32 %v310_v31, %v280_v48  ;;  %v369_v48 = vstv %s725_s4 }
  0xc0   : > { %v131_v38 = vmul.f32 %v654_v53, %v96_v59  ;;  %v132_v55 = vmul.f32 %v656_v54, %v96_v59 }
  0xc2   : > { %v187_v30 = vadd.f32 %v171_v36, %v131_v38  ;;  %v188_v53 = vadd.f32 %v171_v36, %v132_v55  ;;  %v320_v34 = vpop.permute.xlu0 %319  ;;  %v440_v55 = vmov 1966171168  }
  0xc4   : > { %v215_v47 = vpop.permute.xlu1 %214 }
  0xc5   : > { %v251_v32 = vmul.f32 %v662_v61, %v215_v47  ;;  %v252_v24 = vmul.f32 %v664_v62, %v215_v47  ;;  %v344_v47 = vadd.f32 %v343_v4, %v331_v39 }
  0xc7   : > { %v267_v5 = vadd.f32 %v251_v32, %v185_v41  ;;  %v268_v6 = vadd.f32 %v252_v24, %v186_v49 }
  0xc9   : > { %v305_v46 = vpop.permute.xlu1 %304  ;;  %v283_v59 = vmax.f32 %v267_v5, 0.0  ;;  %v284_v58 = vmax.f32 %v268_v6, 0.0 }
  0xca   : > { %v333_v37 = vmul.f32 %v305_v46, %v277_v43  ;;  %v334_v26 = vmul.f32 %v305_v46, %v278_v28 }
  0xcb   : > { %v339_v42 = vmul.f32 %v320_v34, %v283_v59 }
  0xcc   : > { %v345_v56 = vadd.f32 %v344_v47, %v333_v37  ;;  %v358_v54 = vadd.f32 %v357_v7, %v334_v26  ;;  %v376_v37 = vunpack.c.l.s4 %v440_v55 }
  0xce   : > { %v219_v1 = vpop.permute.xlu1 %218  ;;  %v346_v63 = vadd.f32 %v345_v56, %v335_v33  ;;  %v377_v31 = vunpack.c.0.s8 %v376_v37 }
  0xcf   : > { %v253_v50 = vmul.f32 %v662_v61, %v219_v1  ;;  %v254_v45 = vmul.f32 %v664_v62, %v219_v1  ;;  %v359_v61 = vadd.f32 %v358_v54, %v336_v57  ;;  %v340_v62 = vmul.f32 %v320_v34, %v284_v58 }
  0xd0   : > { %v753_v58 = vlaneseq }
  0xd1   : > { %v269_v4 = vadd.f32 %v253_v50, %v187_v30  ;;  %v270_v27 = vadd.f32 %v254_v45, %v188_v53  ;;  %v380_v30 = vsub.s32 %v377_v31, %v639_v40 }
  0xd2   : > { %vm393_vm0 = vcmp.lt.s32.totalorder %v753_v58, 256 }
  0xd3   : > { %v315_v25 = vpop.permute.xlu1 %314  ;;  %v285_v24 = vmax.f32 %v269_v4, 0.0  ;;  %v286_v7 = vmax.f32 %v270_v27, 0.0 }
  0xd4   : > { %v337_v43 = vmul.f32 %v315_v25, %v281_v0  ;;  %v338_v28 = vmul.f32 %v315_v25, %v282_v2 }
  0xd6   : > { %v347_v32 = vadd.f32 %v346_v63, %v337_v43  ;;  %v360_v36 = vadd.f32 %v359_v61, %v338_v28 }
  0xd7   : > { %v325_v5 = vpop.permute.xlu1 %324 }
  0xd8   : > { %v341_v6 = vmul.f32 %v325_v5, %v285_v24  ;;  %v342_v46 = vmul.f32 %v325_v5, %v286_v7  ;;  %v348_v29 = vadd.f32 %v347_v32, %v339_v42  ;;  %v361_v44 = vadd.f32 %v360_v36, %v340_v62 }
  0xda   : > { %v349_v39 = vadd.f32 %v348_v29, %v341_v6  ;;  %v362_v51 = vadd.f32 %v361_v44, %v342_v46 }
  0xdc   : > { %v350_v52 = vrot.slane %v349_v39, 4  ;;  %v363_v41 = vrot.slane %v362_v51, 4 }
  0xde   : > { %v351_v49 = vadd.f32 %v350_v52, %v349_v39  ;;  %v364_v38 = vadd.f32 %v363_v41, %v362_v51 }
  0xe0   : > { %v352_v26 = vrot.slane %v351_v49, 2  ;;  %v365_v60 = vrot.slane %v364_v38, 2 }
  0xe2   : > { %v353_v35 = vadd.f32 %v352_v26, %v351_v49  ;;  %v366_v47 = vadd.f32 %v365_v60, %v364_v38 }
  0xe4   : > { %v354_v1 = vrot.slane %v353_v35, 1  ;;  %v367_v3 = vrot.slane %v366_v47, 1 }
  0xe6   : > { %v355_v50 = vadd.f32 %v354_v1, %v353_v35  ;;  %v368_v45 = vadd.f32 %v367_v3, %v366_v47 }
  0xe8   : > { %v370_v53 = vadd.f32 %v369_v48, %v355_v50  ;;  %v371_v56 = vadd.f32 %v369_v48, %v368_v45 }
  0xea   : > { %v374_v54 = vcombine.low %v370_v53, %v371_v56  ;;  %50 = sbr.rel (!%p48_p0) target bundleno = 11 (0xb), region = 49 }
  0xec   : > { %v381_v59 = vrot.slane %v374_v54, %v380_v30 }
  0xee   : > { %v388_v0 = vrot.slane %v381_v59, %v380_v30 }
  0xf0   : > { %395 = vst.msk [vmem:[%s390_s23] sm:$0x3] %vm393_vm0, %v388_v0 }

</bundles_post_ra>
